<compile_context>
chip_gen: v6e
topology: v6e:2x2x1
jax: 0.10.0
libtpu: 0.0.40
codegen_flags: <defaults>
</compile_context>

<pallas_src>
import jax
import jax.numpy as jnp
from jax.experimental import pallas as pl
from jax.experimental.pallas import tpu as pltpu

OUT_LANES = 128  # lane-dense kernel output width; wrapper slices to 1 column


def disc_kernel(x_ref, y_ref, wbig_ref, w2a_ref, w2b_ref, small_ref, out_ref):
    H = small_ref.shape[-1]
    I2 = y_ref.shape[-1]

    x = x_ref[...]                      # (TB, I1)
    y = y_ref[...]                      # (TB, I2)
    small = small_ref[...]              # (8, H) packed: bbil, b1, b2, w3, b3
    b_bil = small[0:1, :]
    b1 = small[1:2, :]
    b2 = small[2:3, :]
    w3_row = small[3:4, :]
    b3 = small[4:5, 0:1]                # (1, 1)

    # ---- One fused MXU pass: [bilinear partials | fc1 pre-activation] ------
    # wbig = [Wbil_flat (I1, I2*H) | W1.T (I1, H)], Wbil column index = j*H+h.
    t_all = jnp.dot(x, wbig_ref[...], preferred_element_type=jnp.float32)

    # ---- Bilinear: f1[b,h] = bbil[h] + sum_j y[b,j] * t[b, j*H+h] ----------
    # Per-j static lane slice + VPU FMA; H stays on the lane axis throughout.
    # Balanced tree reduction shortens the add chain to log2(I2).
    # TODO(synk): for very large I2 (>~256 fine classes) switch the unrolled
    #             slice loop to a chunked fori_loop to bound vreg live ranges.
    terms = [t_all[:, j * H:(j + 1) * H] * y[:, j:j + 1] for j in range(I2)]
    while len(terms) > 1:
        nxt = [terms[i] + terms[i + 1] for i in range(0, len(terms) - 1, 2)]
        if len(terms) % 2:
            nxt.append(terms[-1])
        terms = nxt
    f1 = jnp.maximum(terms[0] + b_bil, 0.0)
    # TODO(synk): nn.Dropout(0.5) omitted — inference semantics (identity).

    # ---- fc1: Linear(in1 -> hidden) + ReLU (+ dropout identity) ------------
    f2 = jnp.maximum(t_all[:, I2 * H:] + b1, 0.0)

    # ---- fc2_3 first stage: Linear(2H -> H) on concat(f1, f2), ReLU ---------
    # Split form avoids the lane-crossing concatenate:
    #   h2 = f1 @ W2.T[:H] + f2 @ W2.T[H:] + b2
    h2 = (jnp.dot(f1, w2a_ref[...], preferred_element_type=jnp.float32)
          + jnp.dot(f2, w2b_ref[...], preferred_element_type=jnp.float32)
          + b2)
    h2 = jnp.maximum(h2, 0.0)

    # ---- ad_layer3: Linear(H -> 1) as VPU mul + lane reduce (no MXU) --------
    logit = jnp.sum(h2 * w3_row, axis=-1, keepdims=True) + b3   # (TB, 1)
    out_ref[...] = jnp.broadcast_to(logit, out_ref.shape).astype(out_ref.dtype)


def _round_up(a, m):
    return (a + m - 1) // m * m


def init_params(key, in_feature1, in_feature2, hidden_size):
    k = jax.random.split(key, 4)
    # nn.Bilinear weight: (H, I1, I2), N(0, 0.01); bias 0
    w_bil = 0.01 * jax.random.normal(
        k[0], (hidden_size, in_feature1, in_feature2), jnp.float32)
    b_bil = jnp.zeros((hidden_size,), jnp.float32)
    # ad_layer1: (H, I1), N(0, 0.01); bias 0
    w1 = 0.01 * jax.random.normal(k[1], (hidden_size, in_feature1), jnp.float32)
    b1 = jnp.zeros((hidden_size,), jnp.float32)
    # ad_layer2: (H, 2H), N(0, 0.01); bias 0
    w2 = 0.01 * jax.random.normal(k[2], (hidden_size, 2 * hidden_size), jnp.float32)
    b2 = jnp.zeros((hidden_size,), jnp.float32)
    # ad_layer3: (1, H), N(0, 0.3); bias 0
    w3 = 0.3 * jax.random.normal(k[3], (1, hidden_size), jnp.float32)
    b3 = jnp.zeros((), jnp.float32)

    # Kernel packing:
    #   Wbil_flat[i, j*H+h] = w_bil[h, i, j]   -> (I1, I2*H)
    #   wbig = [Wbil_flat | W1.T]              -> (I1, (I2+1)*H)  (one MXU pass)
    wbil_flat = jnp.transpose(w_bil, (1, 2, 0)).reshape(
        in_feature1, in_feature2 * hidden_size)
    wbig = jnp.concatenate([wbil_flat, w1.T], axis=1)
    w2t = w2.T                                                # (2H, H)
    w2a = w2t[:hidden_size, :]                                # (H, H)  acts on f1
    w2b = w2t[hidden_size:, :]                                # (H, H)  acts on f2
    small = jnp.zeros((8, hidden_size), jnp.float32)
    small = small.at[0].set(b_bil).at[1].set(b1).at[2].set(b2)
    small = small.at[3].set(w3[0]).at[4].set(jnp.full((hidden_size,), b3))
    # TODO(synk): on v6e/v7x cast wbig/w2a/w2b/small (and x, y) to bf16 with
    #             f32 accumulation; add a K-tiled reduction grid for wbig once
    #             the weight slab no longer fits v7x's 64 MiB VMEM.

    return dict(
        wbig=wbig, w2a=w2a, w2b=w2b, small=small,
        # originals kept only for the pure-JAX reference
        _w_bil=w_bil, _bbil=b_bil, _w1=w1, _b1=b1, _w2=w2, _b2=b2,
        _w3=w3, _b3=b3,
    )


def bilinear_domain_discriminator(x, y, params, *, batch_block=128):
    B, I1 = x.shape
    I2 = y.shape[1]
    H = params['small'].shape[1]

    # Batch tiling: large batches stream in 128-row tiles ("parallel" axis);
    # small batches are padded up to a single 8-aligned tile.
    TB = batch_block if B >= batch_block else _round_up(B, 8)
    B_pad = _round_up(B, TB)
    if B_pad != B:
        x = jnp.pad(x, ((0, B_pad - B), (0, 0)))
        y = jnp.pad(y, ((0, B_pad - B), (0, 0)))

    out = pl.pallas_call(
        disc_kernel,
        out_shape=jax.ShapeDtypeStruct((B_pad, OUT_LANES), jnp.float32),
        grid=(B_pad // TB,),
        in_specs=[
            pl.BlockSpec((TB, I1), lambda b: (b, 0)),
            pl.BlockSpec((TB, I2), lambda b: (b, 0)),
            pl.BlockSpec((I1, (I2 + 1) * H), lambda b: (0, 0)),
            pl.BlockSpec((H, H), lambda b: (0, 0)),
            pl.BlockSpec((H, H), lambda b: (0, 0)),
            pl.BlockSpec((8, H), lambda b: (0, 0)),
        ],
        out_specs=pl.BlockSpec((TB, OUT_LANES), lambda b: (b, 0)),
        compiler_params=pltpu.CompilerParams(
            dimension_semantics=("parallel",)),
    )(x, y, params['wbig'], params['w2a'], params['w2b'], params['small'])
    return out[:B, :1]


def reference_forward(x, y, p):
    f1 = jnp.einsum('bi,hij,bj->bh', x, p['_w_bil'], y) + p['_bbil'][None, :]
    f1 = jnp.maximum(f1, 0.0)
    f2 = jnp.maximum(x @ p['_w1'].T + p['_b1'][None, :], 0.0)
    f = jnp.concatenate([f1, f2], axis=1)
    h = jnp.maximum(f @ p['_w2'].T + p['_b2'][None, :], 0.0)
    return h @ p['_w3'].T + p['_b3']


if __name__ == "__main__":
    in_feature1 = 32   # backbone feature dim
    in_feature2 = 16   # number of fine classes
    hidden_size = 16
    batch = 8

    key = jax.random.PRNGKey(0)
    kx, ky, kp = jax.random.split(key, 3)
    x = jax.random.normal(kx, (batch, in_feature1), jnp.float32)
    y = jax.random.normal(ky, (batch, in_feature2), jnp.float32)

    params = init_params(kp, in_feature1, in_feature2, hidden_size)

    out = bilinear_domain_discriminator(x, y, params)
    out = jax.block_until_ready(out)

    ref = reference_forward(x, y, params)
    assert out.shape == (batch, 1), out.shape
    assert jnp.allclose(out, ref, atol=1e-4, rtol=1e-4), (out, ref)

    print("KERNEL_OK")
</pallas_src>

<mosaic_0001>
module attributes {stable_mosaic.version = 11 : i64} {
  func.func @disc_kernel(%arg0: i32, %arg1: memref<8x32xf32, #tpu.memory_space<vmem>>, %arg2: memref<8x16xf32, #tpu.memory_space<vmem>>, %arg3: memref<32x272xf32, #tpu.memory_space<vmem>>, %arg4: memref<16x16xf32, #tpu.memory_space<vmem>>, %arg5: memref<16x16xf32, #tpu.memory_space<vmem>>, %arg6: memref<8x16xf32, #tpu.memory_space<vmem>>, %arg7: memref<8x128xf32, #tpu.memory_space<vmem>>) attributes {dimension_semantics = [#tpu.dimension_semantics<parallel>], iteration_bounds = array<i64: 1>, scalar_prefetch = 0 : i64, scratch_operands = 0 : i64, tpu.core_type = #tpu.core_type<tc>, window_params = [{transform_indices = @transform_0, window_bounds = array<i64: 8, 32>}, {transform_indices = @transform_1, window_bounds = array<i64: 8, 16>}, {pipeline_mode = #tpu.pipeline_mode<synchronous>, transform_indices = @transform_2, window_bounds = array<i64: 32, 272>}, {pipeline_mode = #tpu.pipeline_mode<synchronous>, transform_indices = @transform_3, window_bounds = array<i64: 16, 16>}, {pipeline_mode = #tpu.pipeline_mode<synchronous>, transform_indices = @transform_4, window_bounds = array<i64: 16, 16>}, {pipeline_mode = #tpu.pipeline_mode<synchronous>, transform_indices = @transform_5, window_bounds = array<i64: 8, 16>}, {transform_indices = @transform_6, window_bounds = array<i64: 8, 128>}]} {
    %c0 = arith.constant 0 : index
    %c0_0 = arith.constant 0 : index
    %0 = vector.load %arg1[%c0, %c0_0] : memref<8x32xf32, #tpu.memory_space<vmem>>, vector<8x32xf32>
    %c0_1 = arith.constant 0 : index
    %c0_2 = arith.constant 0 : index
    %1 = vector.load %arg2[%c0_1, %c0_2] : memref<8x16xf32, #tpu.memory_space<vmem>>, vector<8x16xf32>
    %c0_3 = arith.constant 0 : index
    %c0_4 = arith.constant 0 : index
    %2 = vector.load %arg6[%c0_3, %c0_4] : memref<8x16xf32, #tpu.memory_space<vmem>>, vector<8x16xf32>
    %3 = vector.extract_strided_slice %2 {offsets = [0, 0], sizes = [1, 16], strides = [1, 1]} : vector<8x16xf32> to vector<1x16xf32>
    %4 = vector.extract_strided_slice %2 {offsets = [1, 0], sizes = [1, 16], strides = [1, 1]} : vector<8x16xf32> to vector<1x16xf32>
    %5 = vector.extract_strided_slice %2 {offsets = [2, 0], sizes = [1, 16], strides = [1, 1]} : vector<8x16xf32> to vector<1x16xf32>
    %6 = vector.extract_strided_slice %2 {offsets = [3, 0], sizes = [1, 16], strides = [1, 1]} : vector<8x16xf32> to vector<1x16xf32>
    %7 = vector.extract_strided_slice %2 {offsets = [4, 0], sizes = [1, 1], strides = [1, 1]} : vector<8x16xf32> to vector<1x1xf32>
    %c0_5 = arith.constant 0 : index
    %c0_6 = arith.constant 0 : index
    %8 = vector.load %arg3[%c0_5, %c0_6] : memref<32x272xf32, #tpu.memory_space<vmem>>, vector<32x272xf32>
    %cst = arith.constant dense<0.000000e+00> : vector<8x272xf32>
    %9 = tpu.matmul %0, %8, %cst {dimension_numbers = #tpu.dot_dimension_numbers<[1], [0], [0], [1], [0, 0, 1, 1], [], []>} : vector<8x32xf32>, vector<32x272xf32>, vector<8x272xf32> -> vector<8x272xf32>
    %10 = vector.extract_strided_slice %9 {offsets = [0, 0], sizes = [8, 16], strides = [1, 1]} : vector<8x272xf32> to vector<8x16xf32>
    %11 = vector.extract_strided_slice %1 {offsets = [0, 0], sizes = [8, 1], strides = [1, 1]} : vector<8x16xf32> to vector<8x1xf32>
    %12 = vector.broadcast %11 : vector<8x1xf32> to vector<8x16xf32>
    %13 = arith.mulf %10, %12 : vector<8x16xf32>
    %14 = vector.extract_strided_slice %9 {offsets = [0, 16], sizes = [8, 16], strides = [1, 1]} : vector<8x272xf32> to vector<8x16xf32>
    %15 = vector.extract_strided_slice %1 {offsets = [0, 1], sizes = [8, 1], strides = [1, 1]} : vector<8x16xf32> to vector<8x1xf32>
    %16 = vector.broadcast %15 : vector<8x1xf32> to vector<8x16xf32>
    %17 = arith.mulf %14, %16 : vector<8x16xf32>
    %18 = vector.extract_strided_slice %9 {offsets = [0, 32], sizes = [8, 16], strides = [1, 1]} : vector<8x272xf32> to vector<8x16xf32>
    %19 = vector.extract_strided_slice %1 {offsets = [0, 2], sizes = [8, 1], strides = [1, 1]} : vector<8x16xf32> to vector<8x1xf32>
    %20 = vector.broadcast %19 : vector<8x1xf32> to vector<8x16xf32>
    %21 = arith.mulf %18, %20 : vector<8x16xf32>
    %22 = vector.extract_strided_slice %9 {offsets = [0, 48], sizes = [8, 16], strides = [1, 1]} : vector<8x272xf32> to vector<8x16xf32>
    %23 = vector.extract_strided_slice %1 {offsets = [0, 3], sizes = [8, 1], strides = [1, 1]} : vector<8x16xf32> to vector<8x1xf32>
    %24 = vector.broadcast %23 : vector<8x1xf32> to vector<8x16xf32>
    %25 = arith.mulf %22, %24 : vector<8x16xf32>
    %26 = vector.extract_strided_slice %9 {offsets = [0, 64], sizes = [8, 16], strides = [1, 1]} : vector<8x272xf32> to vector<8x16xf32>
    %27 = vector.extract_strided_slice %1 {offsets = [0, 4], sizes = [8, 1], strides = [1, 1]} : vector<8x16xf32> to vector<8x1xf32>
    %28 = vector.broadcast %27 : vector<8x1xf32> to vector<8x16xf32>
    %29 = arith.mulf %26, %28 : vector<8x16xf32>
    %30 = vector.extract_strided_slice %9 {offsets = [0, 80], sizes = [8, 16], strides = [1, 1]} : vector<8x272xf32> to vector<8x16xf32>
    %31 = vector.extract_strided_slice %1 {offsets = [0, 5], sizes = [8, 1], strides = [1, 1]} : vector<8x16xf32> to vector<8x1xf32>
    %32 = vector.broadcast %31 : vector<8x1xf32> to vector<8x16xf32>
    %33 = arith.mulf %30, %32 : vector<8x16xf32>
    %34 = vector.extract_strided_slice %9 {offsets = [0, 96], sizes = [8, 16], strides = [1, 1]} : vector<8x272xf32> to vector<8x16xf32>
    %35 = vector.extract_strided_slice %1 {offsets = [0, 6], sizes = [8, 1], strides = [1, 1]} : vector<8x16xf32> to vector<8x1xf32>
    %36 = vector.broadcast %35 : vector<8x1xf32> to vector<8x16xf32>
    %37 = arith.mulf %34, %36 : vector<8x16xf32>
    %38 = vector.extract_strided_slice %9 {offsets = [0, 112], sizes = [8, 16], strides = [1, 1]} : vector<8x272xf32> to vector<8x16xf32>
    %39 = vector.extract_strided_slice %1 {offsets = [0, 7], sizes = [8, 1], strides = [1, 1]} : vector<8x16xf32> to vector<8x1xf32>
    %40 = vector.broadcast %39 : vector<8x1xf32> to vector<8x16xf32>
    %41 = arith.mulf %38, %40 : vector<8x16xf32>
    %42 = vector.extract_strided_slice %9 {offsets = [0, 128], sizes = [8, 16], strides = [1, 1]} : vector<8x272xf32> to vector<8x16xf32>
    %43 = vector.extract_strided_slice %1 {offsets = [0, 8], sizes = [8, 1], strides = [1, 1]} : vector<8x16xf32> to vector<8x1xf32>
    %44 = vector.broadcast %43 : vector<8x1xf32> to vector<8x16xf32>
    %45 = arith.mulf %42, %44 : vector<8x16xf32>
    %46 = vector.extract_strided_slice %9 {offsets = [0, 144], sizes = [8, 16], strides = [1, 1]} : vector<8x272xf32> to vector<8x16xf32>
    %47 = vector.extract_strided_slice %1 {offsets = [0, 9], sizes = [8, 1], strides = [1, 1]} : vector<8x16xf32> to vector<8x1xf32>
    %48 = vector.broadcast %47 : vector<8x1xf32> to vector<8x16xf32>
    %49 = arith.mulf %46, %48 : vector<8x16xf32>
    %50 = vector.extract_strided_slice %9 {offsets = [0, 160], sizes = [8, 16], strides = [1, 1]} : vector<8x272xf32> to vector<8x16xf32>
    %51 = vector.extract_strided_slice %1 {offsets = [0, 10], sizes = [8, 1], strides = [1, 1]} : vector<8x16xf32> to vector<8x1xf32>
    %52 = vector.broadcast %51 : vector<8x1xf32> to vector<8x16xf32>
    %53 = arith.mulf %50, %52 : vector<8x16xf32>
    %54 = vector.extract_strided_slice %9 {offsets = [0, 176], sizes = [8, 16], strides = [1, 1]} : vector<8x272xf32> to vector<8x16xf32>
    %55 = vector.extract_strided_slice %1 {offsets = [0, 11], sizes = [8, 1], strides = [1, 1]} : vector<8x16xf32> to vector<8x1xf32>
    %56 = vector.broadcast %55 : vector<8x1xf32> to vector<8x16xf32>
    %57 = arith.mulf %54, %56 : vector<8x16xf32>
    %58 = vector.extract_strided_slice %9 {offsets = [0, 192], sizes = [8, 16], strides = [1, 1]} : vector<8x272xf32> to vector<8x16xf32>
    %59 = vector.extract_strided_slice %1 {offsets = [0, 12], sizes = [8, 1], strides = [1, 1]} : vector<8x16xf32> to vector<8x1xf32>
    %60 = vector.broadcast %59 : vector<8x1xf32> to vector<8x16xf32>
    %61 = arith.mulf %58, %60 : vector<8x16xf32>
    %62 = vector.extract_strided_slice %9 {offsets = [0, 208], sizes = [8, 16], strides = [1, 1]} : vector<8x272xf32> to vector<8x16xf32>
    %63 = vector.extract_strided_slice %1 {offsets = [0, 13], sizes = [8, 1], strides = [1, 1]} : vector<8x16xf32> to vector<8x1xf32>
    %64 = vector.broadcast %63 : vector<8x1xf32> to vector<8x16xf32>
    %65 = arith.mulf %62, %64 : vector<8x16xf32>
    %66 = vector.extract_strided_slice %9 {offsets = [0, 224], sizes = [8, 16], strides = [1, 1]} : vector<8x272xf32> to vector<8x16xf32>
    %67 = vector.extract_strided_slice %1 {offsets = [0, 14], sizes = [8, 1], strides = [1, 1]} : vector<8x16xf32> to vector<8x1xf32>
    %68 = vector.broadcast %67 : vector<8x1xf32> to vector<8x16xf32>
    %69 = arith.mulf %66, %68 : vector<8x16xf32>
    %70 = vector.extract_strided_slice %9 {offsets = [0, 240], sizes = [8, 16], strides = [1, 1]} : vector<8x272xf32> to vector<8x16xf32>
    %71 = vector.extract_strided_slice %1 {offsets = [0, 15], sizes = [8, 1], strides = [1, 1]} : vector<8x16xf32> to vector<8x1xf32>
    %72 = vector.broadcast %71 : vector<8x1xf32> to vector<8x16xf32>
    %73 = arith.mulf %70, %72 : vector<8x16xf32>
    %74 = arith.addf %13, %17 : vector<8x16xf32>
    %75 = arith.addf %21, %25 : vector<8x16xf32>
    %76 = arith.addf %29, %33 : vector<8x16xf32>
    %77 = arith.addf %37, %41 : vector<8x16xf32>
    %78 = arith.addf %45, %49 : vector<8x16xf32>
    %79 = arith.addf %53, %57 : vector<8x16xf32>
    %80 = arith.addf %61, %65 : vector<8x16xf32>
    %81 = arith.addf %69, %73 : vector<8x16xf32>
    %82 = arith.addf %74, %75 : vector<8x16xf32>
    %83 = arith.addf %76, %77 : vector<8x16xf32>
    %84 = arith.addf %78, %79 : vector<8x16xf32>
    %85 = arith.addf %80, %81 : vector<8x16xf32>
    %86 = arith.addf %82, %83 : vector<8x16xf32>
    %87 = arith.addf %84, %85 : vector<8x16xf32>
    %88 = arith.addf %86, %87 : vector<8x16xf32>
    %89 = vector.broadcast %3 : vector<1x16xf32> to vector<8x16xf32>
    %90 = arith.addf %88, %89 : vector<8x16xf32>
    %cst_7 = arith.constant 0.000000e+00 : f32
    %91 = vector.broadcast %cst_7 : f32 to vector<8x16xf32>
    %92 = arith.maximumf %90, %91 : vector<8x16xf32>
    %93 = vector.extract_strided_slice %9 {offsets = [0, 256], sizes = [8, 16], strides = [1, 1]} : vector<8x272xf32> to vector<8x16xf32>
    %94 = vector.broadcast %4 : vector<1x16xf32> to vector<8x16xf32>
    %95 = arith.addf %93, %94 : vector<8x16xf32>
    %cst_8 = arith.constant 0.000000e+00 : f32
    %96 = vector.broadcast %cst_8 : f32 to vector<8x16xf32>
    %97 = arith.maximumf %95, %96 : vector<8x16xf32>
    %c0_9 = arith.constant 0 : index
    %c0_10 = arith.constant 0 : index
    %98 = vector.load %arg4[%c0_9, %c0_10] : memref<16x16xf32, #tpu.memory_space<vmem>>, vector<16x16xf32>
    %cst_11 = arith.constant dense<0.000000e+00> : vector<8x16xf32>
    %99 = tpu.matmul %92, %98, %cst_11 {dimension_numbers = #tpu.dot_dimension_numbers<[1], [0], [0], [1], [0, 0, 1, 1], [], []>} : vector<8x16xf32>, vector<16x16xf32>, vector<8x16xf32> -> vector<8x16xf32>
    %c0_12 = arith.constant 0 : index
    %c0_13 = arith.constant 0 : index
    %100 = vector.load %arg5[%c0_12, %c0_13] : memref<16x16xf32, #tpu.memory_space<vmem>>, vector<16x16xf32>
    %cst_14 = arith.constant dense<0.000000e+00> : vector<8x16xf32>
    %101 = tpu.matmul %97, %100, %cst_14 {dimension_numbers = #tpu.dot_dimension_numbers<[1], [0], [0], [1], [0, 0, 1, 1], [], []>} : vector<8x16xf32>, vector<16x16xf32>, vector<8x16xf32> -> vector<8x16xf32>
    %102 = arith.addf %99, %101 : vector<8x16xf32>
    %103 = vector.broadcast %5 : vector<1x16xf32> to vector<8x16xf32>
    %104 = arith.addf %102, %103 : vector<8x16xf32>
    %cst_15 = arith.constant 0.000000e+00 : f32
    %105 = vector.broadcast %cst_15 : f32 to vector<8x16xf32>
    %106 = arith.maximumf %104, %105 : vector<8x16xf32>
    %107 = vector.broadcast %6 : vector<1x16xf32> to vector<8x16xf32>
    %108 = arith.mulf %106, %107 : vector<8x16xf32>
    %cst_16 = arith.constant dense<0.000000e+00> : vector<8xf32>
    %109 = vector.multi_reduction <add>, %108, %cst_16 [1] : vector<8x16xf32> to vector<8xf32>
    %110 = vector.shape_cast %109 : vector<8xf32> to vector<8x1xf32>
    %111 = vector.broadcast %7 : vector<1x1xf32> to vector<8x1xf32>
    %112 = arith.addf %110, %111 : vector<8x1xf32>
    %113 = vector.shape_cast %112 : vector<8x1xf32> to vector<8x1xf32>
    %114 = vector.broadcast %113 : vector<8x1xf32> to vector<8x128xf32>
    %c0_17 = arith.constant 0 : index
    %c0_18 = arith.constant 0 : index
    %115 = vector.load %arg7[%c0_17, %c0_18] : memref<8x128xf32, #tpu.memory_space<vmem>>, vector<8x128xf32>
    tpu.vector_store %arg7[%c0_17, %c0_18], %114 {strides = array<i32>} : memref<8x128xf32, #tpu.memory_space<vmem>>, vector<8x128xf32>,
    return
  }
  func.func @transform_0(%arg0: i32) -> (i32, i32) {
    %c0_i32 = arith.constant 0 : i32
    %c0_i32_0 = arith.constant 0 : i32
    return %arg0, %c0_i32 : i32, i32
  }
  func.func @transform_1(%arg0: i32) -> (i32, i32) {
    %c0_i32 = arith.constant 0 : i32
    %c0_i32_0 = arith.constant 0 : i32
    return %arg0, %c0_i32 : i32, i32
  }
  func.func @transform_2(%arg0: i32) -> (i32, i32) {
    %c0_i32 = arith.constant 0 : i32
    %c0_i32_0 = arith.constant 0 : i32
    %c0_i32_1 = arith.constant 0 : i32
    return %c0_i32, %c0_i32_0 : i32, i32
  }
  func.func @transform_3(%arg0: i32) -> (i32, i32) {
    %c0_i32 = arith.constant 0 : i32
    %c0_i32_0 = arith.constant 0 : i32
    %c0_i32_1 = arith.constant 0 : i32
    return %c0_i32, %c0_i32_0 : i32, i32
  }
  func.func @transform_4(%arg0: i32) -> (i32, i32) {
    %c0_i32 = arith.constant 0 : i32
    %c0_i32_0 = arith.constant 0 : i32
    %c0_i32_1 = arith.constant 0 : i32
    return %c0_i32, %c0_i32_0 : i32, i32
  }
  func.func @transform_5(%arg0: i32) -> (i32, i32) {
    %c0_i32 = arith.constant 0 : i32
    %c0_i32_0 = arith.constant 0 : i32
    %c0_i32_1 = arith.constant 0 : i32
    return %c0_i32, %c0_i32_0 : i32, i32
  }
  func.func @transform_6(%arg0: i32) -> (i32, i32) {
    %c0_i32 = arith.constant 0 : i32
    %c0_i32_0 = arith.constant 0 : i32
    return %arg0, %c0_i32 : i32, i32
  }
}

</mosaic_0001>

<bundles_post_ra>
// kernel: tpu_custom_call.1
= control target key start
LH: loop header
LB: loop body
LE: loop exit
PB: predicated region body
PF: predicated region fallthrough
CT: control target
= control target key end

     0   :  { %11 = vsyncpa [#allocation3], 0  ;;  %s994_s0 = inlined_call_operand.hbm [shape: f32[8,32], index: 0, kind: input, shape index: {}]   ;;  %s995_s1 = inlined_call_operand.hbm [shape: f32[8,16], index: 1, kind: input, shape index: {}]   ;;  %s996_s2 = inlined_call_operand.hbm [shape: f32[32,272], index: 2, kind: input, shape index: {}]   ;;  %s997_s3 = inlined_call_operand.hbm [shape: f32[16,16], index: 3, kind: input, shape index: {}]   ;;  %s998_s4 = inlined_call_operand.hbm [shape: f32[16,16], index: 4, kind: input, shape index: {}]   ;;  %s999_s5 = inlined_call_operand.vmem [shape: f32[8,16], index: 5, kind: input, shape index: {}]   ;;  %s1000_s6 = inlined_call_operand.hbm [shape: f32[8,128], index: 6, kind: output, shape index: {}]  }
   0x1   :  { %12 = vsyncpa [#allocation6], 0 }
   0x2   :  { %13 = vsyncpa [#allocation9], 0 }
   0x3   :  { %14 = vsyncpa [#allocation4], 0  ;;  %s820_s21 = smov [#allocation5]   ;;  %s821_s23 = smov [#allocation8]  }
   0x4   :  { %s31_s22 = sshll.u32 %s820_s21, 4  ;;  %s52_s24 = sshll.u32 %s821_s23, 4  ;;  %s32_s22 = int_to_ptr.vmem [resolvable:$true] %s31_s22  ;;  %s53_s24 = int_to_ptr.vmem [resolvable:$true] %s52_s24 }
   0x5   :  { %s700_s25 = scalar_lea.vmem %s32_s22, 128  ;;  %p705_p1 = scmp.lt.s32.totalorder %s32_s22, %s32_s22 }
   0x6   :  { %p701_p0 = scmp.ne.s32.totalorder %s32_s22, %s700_s25  ;;  %p706_p2 = scmp.lt.s32.totalorder %s700_s25, %s700_s25 }
   0x8   :  { %p707_p3 = por %p706_p2, %p705_p1 }
   0xa   :  { %p708_p4 = pnand %p707_p3, %p701_p0 }
   0xc   :  { %711 = shalt.err (!%p708_p4)
}
   0xd   :  { %34 = dma.hbm_to_vmem [thread:$0]  %s995_s1, 128, %s32_s22, [#allocation6]  }
   0xe   :  { %s720_s28 = scalar_lea.vmem %s53_s24, 256  ;;  %p725_p6 = scmp.lt.s32.totalorder %s53_s24, %s53_s24 }
   0xf   :  { %p721_p5 = scmp.ne.s32.totalorder %s53_s24, %s720_s28  ;;  %p726_p7 = scmp.lt.s32.totalorder %s720_s28, %s720_s28 }
  0x11   :  { %p727_p8 = por %p726_p7, %p725_p6 }
  0x13   :  { %p728_p9 = pnand %p727_p8, %p721_p5 }
  0x15   :  { %731 = shalt.err (!%p728_p9)
}
  0x16   :  { %s822_s29 = smov 128   ;;  %s823_s30 = smov 8  }
  0x17   :  { %58 = dma.hbm_to_vmem [thread:$0]  %s997_s3, 256, %s53_s24, [#allocation9], %s822_s29, %s822_s29, %s823_s30  }
  0x18   :  { %s824_s9 = smov [#allocation2]   ;;  %s825_s11 = smov [#allocation7]  }
  0x19   :  { %s21_s10 = sshll.u32 %s824_s9, 4  ;;  %s40_s1 = sshll.u32 %s825_s11, 4  ;;  %s22_s10 = int_to_ptr.vmem [resolvable:$true] %s21_s10  ;;  %s41_s1 = int_to_ptr.vmem [resolvable:$true] %s40_s1 }
  0x1a   :  { %s740_s12 = scalar_lea.vmem %s22_s10, 128  ;;  %p745_p11 = scmp.lt.s32.totalorder %s22_s10, %s22_s10 }
  0x1b   :  { %p741_p10 = scmp.ne.s32.totalorder %s22_s10, %s740_s12  ;;  %p746_p12 = scmp.lt.s32.totalorder %s740_s12, %s740_s12 }
  0x1d   :  { %p747_p13 = por %p746_p12, %p745_p11 }
  0x1f   :  { %p748_p0 = pnand %p747_p13, %p741_p10 }
  0x21   :  { %751 = shalt.err (!%p748_p0)
}
  0x22   :  { %24 = dma.hbm_to_vmem [thread:$0]  %s994_s0, 128, %s22_s10, [#allocation3]  }
  0x23   :  { %s760_s15 = scalar_lea.vmem %s41_s1, 1536  ;;  %p765_p2 = scmp.lt.s32.totalorder %s41_s1, %s41_s1 }
  0x24   :  { %p761_p1 = scmp.ne.s32.totalorder %s41_s1, %s760_s15  ;;  %p766_p3 = scmp.lt.s32.totalorder %s760_s15, %s760_s15 }
  0x26   :  { %p767_p4 = por %p766_p3, %p765_p2 }
  0x28   :  { %p768_p5 = pnand %p767_p4, %p761_p1 }
  0x2a   :  { %771 = shalt.err (!%p768_p5)
}
  0x2b   :  { %s826_s3 = smov 384   ;;  %s827_s16 = smov 24  }
  0x2c   :  { %46 = dma.hbm_to_vmem [thread:$0]  %s996_s2, 1536, %s41_s1, [#allocation6], %s826_s3, %s826_s3, %s827_s16  }
  0x2d   :  { %s828_s19 = smov [#allocation10]  }
  0x2e   :  { %s64_s20 = sshll.u32 %s828_s19, 4  ;;  %s65_s20 = int_to_ptr.vmem [resolvable:$true] %s64_s20 }
  0x2f   :  { %s780_s21 = scalar_lea.vmem %s65_s20, 256  ;;  %p785_p7 = scmp.lt.s32.totalorder %s65_s20, %s65_s20 }
  0x30   :  { %p781_p6 = scmp.ne.s32.totalorder %s65_s20, %s780_s21  ;;  %p786_p8 = scmp.lt.s32.totalorder %s780_s21, %s780_s21 }
  0x32   :  { %p787_p9 = por %p786_p8, %p785_p7 }
  0x34   :  { %p788_p10 = pnand %p787_p9, %p781_p6 }
  0x36   :  { %791 = shalt.err (!%p788_p10)
}
  0x37   :  { %70 = dma.hbm_to_vmem [thread:$0]  %s998_s4, 256, %s65_s20, [#allocation9], %s822_s29, %s822_s29, %s823_s30  }
  0x38   :  { %812 = dma.done.wait [#allocation3], 128  }
  0x39   :  { %813 = vsyncadd [#allocation3], 4294967168 }
  0x3a   :  { %814 = dma.done.wait [#allocation6], 1664  }
  0x3b   :  { %815 = vsyncadd [#allocation6], 4294965632 }
  0x3c   :  { %816 = dma.done.wait [#allocation9], 512  }
  0x3d   :  { %817 = vsyncadd [#allocation9], 4294966784  ;;  %v829_v0 = vmov 0.0   ;;  %v830_v1 = vmov 3   ;;  %v831_v2 = vmov 7   ;;  %v101_v3 = vld [vmem:[#allocation7 + $0x50] sm:$0xff] }
  0x3e   :  { %171 = vmatprep.mubr.f32.mxu0 %v829_v0  ;;  %678 = vset.pattern.permute.xlu1 %v830_v1  ;;  %v100_v4 = vld [vmem:[#allocation7 + $0x48] sm:$0xff]  ;;  %v98_v5 = vld [vmem:[#allocation7 + $0x38] sm:$0xff]  ;;  %v97_v6 = vld [vmem:[#allocation7 + $0x30] sm:$0xff]  ;;  %vm103_vm0 = vcmask 261120   ;;  %v832_v13 = vmov 5   ;;  %v833_v14 = vmov 15  }
  0x3f   :  { %676 = vset.pattern.permute.xlu0 %v831_v2  ;;  %620 = vmatprep.subr.mxu1 %v829_v0  ;;  %v95_v7 = vld [vmem:[#allocation7 + $0x20] sm:$0xff]  ;;  %v94_v8 = vld [vmem:[#allocation7 + $0x18] sm:$0xff]  ;;  %v92_v10 = vld [vmem:[#allocation7 + $0x8] sm:$0xff]  ;;  %v834_v15 = vmov 6   ;;  %v835_v16 = vmov 11   ;;  %v836_v17 = vmov 13  }
  0x40   :  { %131 = vmatprep.subr.mxu0 %v101_v3  ;;  %v909_v9 = vld [vmem:[#allocation5] sm:$0xff]  ;;  %v91_v11 = vld [vmem:[#allocation7] sm:$0xff]  ;;  %v913_v12 = vld [vmem:[#allocation2] sm:$0xff]  ;;  %v837_v18 = vmov 14   ;;  %v838_v19 = vmov 1   ;;  %v839_v20 = vmov 2  }
  0x41   :  { %132 = vmatpush1.msra.mxu0 %v100_v4  ;;  %265 = vperm.xlu1 %678, %v909_v9   ;;  %s840_s2 = smov 112   ;;  %v841_v28 = vmov 9   ;;  %v842_v29 = vmov 4   ;;  %v843_v33 = vmov 0   ;;  %v844_v34 = vmov 10   ;;  %v102_v39 = vld [vmem:[#allocation7 + $0x58] sm:$0xff] }
  0x42   :  { %133 = vmatprep.subr.mxu0 %v98_v5  ;;  %285 = vperm.xlu0 %676, %v909_v9   ;;  %v845_v37 = vmov 12   ;;  %v99_v40 = vld [vmem:[#allocation7 + $0x40] sm:$0xff]  ;;  %v846_v42 = vmov 8   ;;  %v96_v43 = vld [vmem:[#allocation7 + $0x28] sm:$0xff]  ;;  %vm847_vm1 = vmmov 0   ;;  %v93_v45 = vld [vmem:[#allocation7 + $0x10] sm:$0xff]  ;;  %v400_v4 = vlaneseq }
  0x43   :  { %134 = vmatpush1.msra.mxu0 %v97_v6  ;;  %621 = vmatpush3.msra.mxu1 %v102_v39  ;;  %s848_s4 = smov 96   ;;  %v970_v6 = vld [vmem:[%s999_s5] sm:$0xff]  ;;  %vm416_vm2 = vcmask 130048   ;;  %s849_s5 = smov 64  }
  0x44   :  { %135 = vmatprep.subr.mxu0 %v95_v7  ;;  %622 = vmatprep.subr.mxu1 %v829_v0  ;;  %v965_v5 = vshrl.u32 %v400_v4, 7  ;;  %s850_s25 = smov [#allocation11]  }
  0x45   :  { %136 = vmatpush1.msra.mxu0 %v94_v8  ;;  %679 = vset.pattern.permute.xlu1 %v832_v13  ;;  %s594_s26 = sshll.u32 %s850_s25, 4  ;;  %s595_s26 = int_to_ptr.vmem [resolvable:$true] %s594_s26 }
  0x46   :  { %137 = vmatprep.subr.mxu0 %v92_v10  ;;  %275 = vperm.xlu1 %679, %v909_v9   ;;  %v408_v7 = vsub.s32 1, %v965_v5  ;;  %s792_s27 = scalar_lea.vmem %s595_s26, 128  ;;  %p797_p12 = scmp.lt.s32.totalorder %s595_s26, %s595_s26 }
  0x47   :  { %138 = vmatpush1.msra.mxu0 %v91_v11  ;;  %677 = vset.pattern.permute.xlu0 %v833_v14  ;;  %p793_p11 = scmp.ne.s32.totalorder %s595_s26, %s792_s27  ;;  %p798_p13 = scmp.lt.s32.totalorder %s792_s27, %s792_s27 }
  0x48   :  { %605 = vmatmul.mubr.msk.f32.vlgmr.msra.gmra.mxu0 %vm103_vm0, %v913_v12  ;;  %631 = vmatprep.subr.mxu0 %v829_v0 }
  0x49   :  { %325 = vperm.xlu0 %677, %v909_v9   ;;  %623 = vmatpush3.msra.mxu1 %v99_v40  ;;  %p799_p0 = por %p798_p13, %p797_p12 }
  0x4a   :  { %680 = vset.pattern.permute.xlu1 %v834_v15  ;;  %628 = vmatprep.mubr.msk.f32.mxu1 %vm847_vm1, %v829_v0  ;;  %v413_v15 = vld [vmem:[#allocation8 + $0x8] sm:$0xff] }
  0x4b   :  { %280 = vperm.xlu1 %680, %v909_v9   ;;  %624 = vmatprep.subr.mxu1 %v829_v0  ;;  %p800_p1 = pnand %p799_p0, %p793_p11 }
  0x4c   :  { %635 = vmatprep.mubr.msk.f32.mxu0 %vm847_vm1, %v829_v0  ;;  %625 = vmatpush3.msra.mxu1 %v96_v43 }
  0x4d   :  { %681 = vset.pattern.permute.xlu0 %v835_v16  ;;  %626 = vmatprep.subr.mxu1 %v829_v0  ;;  %v414_v16 = vld [vmem:[#allocation10] sm:$0xff] }
  0x4e   :  { %305 = vperm.xlu0 %681, %v909_v9   ;;  %627 = vmatpush3.msra.mxu1 %v93_v45 }
  0x4f   :  { %682 = vset.pattern.permute.xlu1 %v836_v17  ;;  %629 = vmatmul.mubr.msk.f32.vlgmr.msra.gmra.mxu1 %vm103_vm0, %v913_v12  ;;  %v415_v12 = vld [vmem:[#allocation10 + $0x8] sm:$0xff] }
  0x50   :  { %315 = vperm.xlu1 %682, %v909_v9   ;;  %638 = vmatprep.subr.mxu1 %v829_v0 }
  0x51   :  { %642 = vmatprep.mubr.msk.f32.mxu1 %vm847_vm1, %v829_v0  ;;  %632 = vmatpush3.msra.mxu0 %v415_v12 }
  0x52   :  { %684 = vset.pattern.permute.xlu0 %v838_v19  ;;  %633 = vmatprep.subr.mxu0 %v829_v0  ;;  %v412_v19 = vld [vmem:[#allocation8] sm:$0xff] }
  0x53   :  { %639 = vmatpush3.msra.mxu1 %v413_v15  ;;  %634 = vmatpush3.msra.mxu0 %v414_v16 }
  0x54   :  { %683 = vset.pattern.permute.xlu1 %v837_v18  ;;  %640 = vmatprep.subr.mxu1 %v829_v0 }
  0x55   :  { %320 = vperm.xlu1 %683, %v909_v9   ;;  %641 = vmatpush3.msra.mxu1 %v412_v19 }
  0x59   :  { %685 = vset.pattern.permute.xlu1 %v839_v20 }
  0xbc   :  { %v266_v27 = vpop.permute.xlu1 %265 }
  0xbd   :  { %v286_v21 = vpop.permute.xlu0 %285 }
  0xc1   :  { %v276_v32 = vpop.permute.xlu1 %275 }
  0xc4   :  { %v326_v24 = vpop.permute.xlu0 %325 }
  0xc6   :  { %v281_v36 = vpop.permute.xlu1 %280 }
  0xc9   :  { %v306_v31 = vpop.permute.xlu0 %305 }
  0xcb   :  { %v316_v41 = vpop.permute.xlu1 %315 }
  0xd0   :  { %v321_v46 = vpop.permute.xlu1 %320 }
 0x108   :  { %v924_v22 = vpop.f32.mrf.mxu0 }
 0x109   :  { %v288_v23 = vmul.f32 %v286_v21, %v924_v22  ;;  %v268_v30 = vmul.f32 %v266_v27, %v924_v22  ;;  %v278_v38 = vmul.f32 %v276_v32, %v924_v22  ;;  %v283_v47 = vmul.f32 %v281_v36, %v924_v22 }
 0x10a   :  { %v927_v25 = vpop.f32.mrf.mxu0 }
 0x10b   :  { %345 = vrot.lane.b32.xlu0 %v288_v23, %s840_s2  ;;  %v328_v26 = vmul.f32 %v326_v24, %v927_v25  ;;  %v308_v35 = vmul.f32 %v306_v31, %v927_v25  ;;  %v318_v44 = vmul.f32 %v316_v41, %v927_v25  ;;  %v323_v50 = vmul.f32 %v321_v46, %v927_v25 }
 0x10d   :  { %365 = vrot.lane.b32.xlu1 %v328_v26, %s840_s2 }
 0x10f   :  { %255 = vperm.xlu0 %684, %v909_v9   ;;  %v244_v10 = vpop.f32.mrf.mxu1 }
 0x111   :  { %260 = vperm.xlu1 %685, %v909_v9   ;;  %v630_v13 = vpop.f32.mrf.mxu1 }
 0x113   :  { %687 = vset.pattern.permute.xlu0 %v841_v28 }
 0x114   :  { %295 = vperm.xlu0 %687, %v909_v9  }
 0x115   :  { %686 = vset.pattern.permute.xlu1 %v842_v29 }
 0x116   :  { %270 = vperm.xlu1 %686, %v909_v9  }
 0x118   :  { %335 = vrot.lane.b32.xlu0 %v268_v30, %s840_s2 }
 0x119   :  { %690 = vset.pattern.permute.xlu0 %v843_v33 }
 0x11a   :  { %688 = vset.pattern.permute.xlu1 %v844_v34 }
 0x11b   :  { %300 = vperm.xlu1 %688, %v909_v9  }
 0x11c   :  { %355 = vrot.lane.b32.xlu0 %v308_v35, %s840_s2 }
 0x11f   :  { %689 = vset.pattern.permute.xlu1 %v845_v37 }
 0x120   :  { %310 = vperm.xlu1 %689, %v909_v9  }
 0x124   :  { %340 = vrot.lane.b32.xlu1 %v278_v38, %s840_s2  ;;  %v402_v38 = vsub.s32 0, %v965_v5 }
 0x125   :  { %691 = vset.pattern.permute.xlu1 %v846_v42 }
 0x128   :  { %360 = vrot.lane.b32.xlu1 %v318_v44, %s840_s2  ;;  %v403_v44 = vrot.slane %v970_v6, %v402_v38 }
 0x17d   :  { %v346_v48 = vpop.permute.xlu0 %345 }
 0x17e   :  { %v348_v49 = vadd.f32 %v346_v48, %v283_v47 }
 0x17f   :  { %v366_v51 = vpop.permute.xlu1 %365 }
 0x180   :  { %v368_v52 = vadd.f32 %v366_v51, %v323_v50  ;;  %375 = vrot.lane.b32.xlu0 %v348_v49, %s848_s4  ;;  %v565_v49 = vsub.s32 2, %v965_v5  ;;  %v571_v51 = vsub.s32 3, %v965_v5 }
 0x182   :  { %385 = vrot.lane.b32.xlu1 %v368_v52, %s848_s4  ;;  %v566_v50 = vrot.slane %v970_v6, %v565_v49 }
 0x184   :  { %250 = vperm.xlu0 %690, %v909_v9  }
 0x186   :  { %290 = vperm.xlu1 %691, %v909_v9   ;;  %v409_v9 = vrot.slane %v970_v6, %v408_v7 }
 0x188   :  { %v410_v11 = vadd.f32 %v409_v9, %v244_v10 }
 0x18a   :  { %v256_v53 = vpop.permute.xlu0 %255  ;;  %v411_v14 = vmax.f32 %v410_v11, 0.0 }
 0x18b   :  { %v258_v54 = vmul.f32 %v256_v53, %v924_v22 }
 0x18c   :  { %v261_v55 = vpop.permute.xlu1 %260  ;;  %636 = vmatmul.mubr.msk.f32.vlgmr.msra.gmra.mxu0 %vm416_vm2, %v411_v14 }
 0x18d   :  { %330 = vrot.lane.b32.xlu1 %v258_v54, %s840_s2  ;;  %v263_v59 = vmul.f32 %v261_v55, %v924_v22 }
 0x18f   :  { %v296_v56 = vpop.permute.xlu0 %295 }
 0x190   :  { %v298_v57 = vmul.f32 %v296_v56, %v927_v25  ;;  %v572_v56 = vrot.slane %v970_v6, %v571_v51 }
 0x191   :  { %v271_v58 = vpop.permute.xlu1 %270 }
 0x192   :  { %350 = vrot.lane.b32.xlu0 %v298_v57, %s840_s2  ;;  %v273_v17 = vmul.f32 %v271_v58, %v924_v22 }
 0x193   :  { %v336_v60 = vpop.permute.xlu0 %335 }
 0x194   :  { %v338_v61 = vadd.f32 %v336_v60, %v263_v59  ;;  %v579_v60 = vsub.s32 4, %v965_v5 }
 0x196   :  { %v301_v62 = vpop.permute.xlu1 %300  ;;  %370 = vrot.lane.b32.xlu1 %v338_v61, %s848_s4  ;;  %v580_v61 = vrot.slane %v970_v6, %v579_v60 }
 0x197   :  { %v303_v63 = vmul.f32 %v301_v62, %v927_v25  ;;  %v356_v1 = vpop.permute.xlu0 %355 }
 0x199   :  { %v358_v2 = vadd.f32 %v356_v1, %v303_v63 }
 0x19b   :  { %380 = vrot.lane.b32.xlu0 %v358_v2, %s848_s4  ;;  %v311_v3 = vpop.permute.xlu1 %310 }
 0x19c   :  { %v313_v20 = vmul.f32 %v311_v3, %v927_v25 }
 0x19f   :  { %v341_v8 = vpop.permute.xlu1 %340 }
 0x1a0   :  { %v343_v21 = vadd.f32 %v341_v8, %v273_v17 }
 0x1a3   :  { %v361_v18 = vpop.permute.xlu1 %360 }
 0x1a4   :  { %v363_v24 = vadd.f32 %v361_v18, %v313_v20 }
 0x1f2   :  { %v376_v23 = vpop.permute.xlu0 %375 }
 0x1f3   :  { %v378_v26 = vadd.f32 %v376_v23, %v343_v21 }
 0x1f4   :  { %v386_v27 = vpop.permute.xlu1 %385 }
 0x1f5   :  { %v388_v28 = vadd.f32 %v386_v27, %v363_v24  ;;  %390 = vrot.lane.b32.xlu1 %v378_v26, %s849_s5 }
 0x1f7   :  { %395 = vrot.lane.b32.xlu0 %v388_v28, %s849_s5 }
 0x1ff   :  { %v251_v30 = vpop.permute.xlu0 %250 }
 0x200   :  { %v253_v34 = vmul.f32 %v251_v30, %v924_v22 }
 0x201   :  { %v291_v29 = vpop.permute.xlu1 %290 }
 0x202   :  { %v293_v0 = vmul.f32 %v291_v29, %v927_v25 }
 0x204   :  { %v351_v32 = vpop.permute.xlu0 %350 }
 0x205   :  { %v331_v31 = vpop.permute.xlu1 %330  ;;  %v353_v36 = vadd.f32 %v351_v32, %v293_v0 }
 0x206   :  { %v333_v37 = vadd.f32 %v331_v31, %v253_v34 }
 0x209   :  { %v371_v33 = vpop.permute.xlu1 %370 }
 0x20a   :  { %v373_v40 = vadd.f32 %v371_v33, %v333_v37 }
 0x20d   :  { %v381_v35 = vpop.permute.xlu0 %380 }
 0x20e   :  { %v383_v41 = vadd.f32 %v381_v35, %v353_v36 }
 0x24c   :  { %v486_v25 = vpop.f32.mrf.mxu0 }
 0x24e   :  { %v637_v22 = vpop.f32.mrf.mxu0 }
 0x267   :  { %v391_v39 = vpop.permute.xlu1 %390 }
 0x268   :  { %v393_v43 = vadd.f32 %v391_v39, %v373_v40 }
 0x269   :  { %v396_v42 = vpop.permute.xlu0 %395 }
 0x26a   :  { %v398_v45 = vadd.f32 %v396_v42, %v383_v41 }
 0x26c   :  { %v399_v46 = vadd.f32 %v398_v45, %v393_v43 }
 0x26e   :  { %v404_v47 = vadd.f32 %v403_v44, %v399_v46 }
 0x270   :  { %v405_v48 = vmax.f32 %v404_v47, 0.0 }
 0x272   :  { %643 = vmatmul.mubr.msk.f32.vlgmr.msra.gmra.mxu1 %vm416_vm2, %v405_v48 }
 0x332   :  { %v559_v52 = vpop.f32.mrf.mxu1 }
 0x333   :  { %v560_v53 = vadd.f32 %v559_v52, %v486_v25 }
 0x334   :  { %v644_v54 = vpop.f32.mrf.mxu1 }
 0x335   :  { %v567_v55 = vadd.f32 %v566_v50, %v560_v53 }
 0x337   :  { %v568_v57 = vmax.f32 %v567_v55, 0.0 }
 0x339   :  { %v573_v58 = vmul.f32 %v572_v56, %v568_v57 }
 0x33b   :  { %v574_v59 = vsel %vm416_vm2, %v573_v58, 0.0 }
 0x33c   :  { %575 = vadd.xlane.f32.xlu1 %v574_v59 }
 0x3c5   :  { %v576_v62 = vpop.xlane.xlu1 %575 }
 0x3c6   :  { %v581_v63 = vadd.f32 %v580_v61, %v576_v62 }
 0x3c8   :  { %584 = vperm.xlu0 %690, %v581_v63  }
 0x443   :  { %v585_v1 = vpop.permute.xlu0 %584 }
 0x444   :  { %587 = vst [vmem:[#allocation11] sm:$0xff] %v585_v1 }
 0x445   :  { %803 = shalt.err (!%p800_p1)
}
 0x446   :  { %597 = dma.vmem_to_hbm [thread:$0]  %s595_s26, 128, %s1000_s6, [#allocation4]  }
 0x447   :  { %818 = dma.done.wait [#allocation4], 128  }
 0x448   :  { %819 = vsyncadd [#allocation4], 4294967168 }
 0x449   :  { %601 = vsyncpa [#allocation3], 1 }
 0x44a   :  { %602 = vsyncpa [#allocation6], 1 }
 0x44b   :  { %603 = vsyncpa [#allocation9], 1 }
 0x44c   :  { %604 = vsyncpa [#allocation4], 1 }

</bundles_post_ra>
